<compile_context>
chip_gen: v7x
topology: tpu7x:2x2x1
jax: 0.10.0
libtpu: 0.0.40
codegen_flags: <defaults>
</compile_context>

<pallas_src>
import functools

import jax
import jax.numpy as jnp
from jax import lax
from jax.experimental import pallas as pl
from jax.experimental.pallas import tpu as pltpu

_LANES = 128
_SUBLANES = 8
_MAX_BLOCK_ROWS = 4096     # (4096, 128) f32 tile = 2 MiB; 2 streams x 2 bufs = 8 MiB
_CHUNK_ROWS = 64           # 8 vregs per f32 stream per chunk -> vreg-resident chain
_NUM_SPLITS = 2            # leading "parallel" grid axis (dual-TC on v7x)


def _dice_kernel(x_ref, t_ref, out_ref, *, rows_kernel, block_rows, grid_k,
                 needs_mask):
    c = pl.program_id(0)
    k = pl.program_id(1)

    @pl.when(k == 0)
    def _init():
        out_ref[...] = jnp.zeros_like(out_ref)

    chunk = min(_CHUNK_ROWS, block_rows)
    n_chunks = block_rows // chunk
    rem_rows = block_rows - n_chunks * chunk   # multiple of 8 by construction

    def fold(v):
        # (r, 128) -> (8, 128) partial sums: pure VPU vreg adds, no XLU.
        return jnp.sum(v.reshape(-1, _SUBLANES, _LANES), axis=0)

    def piece(accs, start, nrows, valid):
        x = x_ref[pl.ds(start, nrows), :].astype(jnp.float32)
        t = t_ref[pl.ds(start, nrows), :].astype(jnp.float32)
        # sigmoid(x) == 0.5*tanh(0.5*x) + 0.5 : one EUP push per vreg.
        p = 0.5 * jnp.tanh(0.5 * x) + 0.5
        if valid is not None:
            # Mask rows past the (statically known) end of real data; select, not
            # multiply, so garbage (NaN/inf) in the partial-block padding is dropped.
            rid = lax.broadcasted_iota(jnp.int32, (nrows, _LANES), 0) + start
            msk = rid < valid
            p = jnp.where(msk, p, 0.0)
            t = jnp.where(msk, t, 0.0)
        a_pt, a_p, a_t = accs
        return (a_pt + fold(p * t), a_p + fold(p), a_t + fold(t))

    def run(valid):
        zero = jnp.zeros((_SUBLANES, _LANES), jnp.float32)
        accs = (zero, zero, zero)
        if n_chunks == 1:
            accs = piece(accs, 0, chunk, valid)
        elif n_chunks > 1:
            def body(i, a):
                start = pl.multiple_of(i * chunk, chunk)
                return piece(a, start, chunk, valid)
            accs = lax.fori_loop(0, n_chunks, body, accs)
        if rem_rows:
            accs = piece(accs, n_chunks * chunk, rem_rows, valid)
        out_ref[0, 0] += accs[0]   # sum(sigmoid(x) * t)
        out_ref[0, 1] += accs[1]   # sum(sigmoid(x))
        out_ref[0, 2] += accs[2]   # sum(t)

    if not needs_mask:
        run(None)
    else:
        row0 = (c * grid_k + k) * block_rows
        is_partial = row0 + block_rows > rows_kernel

        @pl.when(jnp.logical_not(is_partial))
        def _full():
            run(None)

        @pl.when(is_partial)
        def _partial():
            # Covers both the ragged last block and (clamped) dummy grid steps,
            # for which rows_kernel - row0 <= 0 masks everything to zero.
            run(rows_kernel - row0)


def _partial_sums(x2, t2):
    """x2/t2: (rows, 128), rows a multiple of 8.  Returns 3 f32 partial sums."""
    rows = x2.shape[0]
    block_rows = rows if rows <= _MAX_BLOCK_ROWS else _MAX_BLOCK_ROWS
    total_blocks = pl.cdiv(rows, block_rows)
    num_splits = _NUM_SPLITS if total_blocks >= 4 * _NUM_SPLITS else 1
    grid_k = pl.cdiv(total_blocks, num_splits)
    needs_mask = (num_splits * grid_k * block_rows) != rows

    kernel = functools.partial(
        _dice_kernel, rows_kernel=rows, block_rows=block_rows, grid_k=grid_k,
        needs_mask=needs_mask)

    def in_map(c, k):
        # Clamp so dummy grid steps / the ragged last block never DMA out of bounds;
        # the kernel masks their contribution to exactly zero.
        return (jnp.minimum(c * grid_k + k, total_blocks - 1), 0)

    in_spec = pl.BlockSpec((block_rows, _LANES), in_map)
    out_spec = pl.BlockSpec((1, 3, _SUBLANES, _LANES), lambda c, k: (c, 0, 0, 0))

    partials = pl.pallas_call(
        kernel,
        out_shape=jax.ShapeDtypeStruct(
            (num_splits, 3, _SUBLANES, _LANES), jnp.float32),
        grid_spec=pltpu.PrefetchScalarGridSpec(
            num_scalar_prefetch=0,
            grid=(num_splits, grid_k),
            in_specs=[in_spec, in_spec],
            out_specs=out_spec,
        ),
        compiler_params=pltpu.CompilerParams(
            dimension_semantics=("parallel", "arbitrary"),
            vmem_limit_bytes=32 * 1024 * 1024),
    )(x2, t2)

    # Tiny finalize (num_splits*3*8*128 floats) in plain JAX.
    return jnp.sum(partials, axis=(0, 2, 3))


def dice_loss(inputs, targets, smooth=1.0):
    """Matches DiceLoss.forward(inputs, targets, smooth)."""
    x_flat = jnp.reshape(inputs, (-1,))
    t_flat = jnp.reshape(targets, (-1,))
    n = x_flat.shape[0]

    # Kernel handles the largest multiple of 1024 elements (rows of 128 lanes,
    # row count a multiple of 8) -> free metadata reshape, no HBM pad/copy when
    # n % 1024 == 0 (the common case).  Any ragged tail (<1024 elems) is plain JAX.
    m = (n // (_SUBLANES * _LANES)) * (_SUBLANES * _LANES)

    s_pt = jnp.zeros((), jnp.float32)
    s_p = jnp.zeros((), jnp.float32)
    s_t = jnp.zeros((), jnp.float32)

    if m > 0:
        x_main = x_flat if m == n else x_flat[:m]
        t_main = t_flat if m == n else t_flat[:m]
        sums = _partial_sums(x_main.reshape(m // _LANES, _LANES),
                             t_main.reshape(m // _LANES, _LANES))
        s_pt, s_p, s_t = sums[0], sums[1], sums[2]

    if m < n:
        xt = x_flat[m:].astype(jnp.float32)
        tt = t_flat[m:].astype(jnp.float32)
        pt = jax.nn.sigmoid(xt)
        s_pt = s_pt + jnp.sum(pt * tt)
        s_p = s_p + jnp.sum(pt)
        s_t = s_t + jnp.sum(tt)

    dice = (2.0 * s_pt + smooth) / (s_p + s_t + smooth)
    return 1.0 - dice


if __name__ == "__main__":
    key = jax.random.PRNGKey(0)
    k1, k2 = jax.random.split(key)

    # Small NCHW logits/targets pair consistent with the module.
    shape = (2, 4, 16, 16)
    inputs = jax.random.normal(k1, shape, dtype=jnp.float32)
    targets = (jax.random.uniform(k2, shape) > 0.5).astype(jnp.float32)

    loss = jax.jit(dice_loss)(inputs, targets)
    loss = jax.block_until_ready(loss)

    # Pure-JAX reference (same math as the PyTorch module).
    p = jax.nn.sigmoid(inputs).reshape(-1)
    t = targets.reshape(-1)
    inter = jnp.sum(p * t)
    ref = 1.0 - (2.0 * inter + 1.0) / (jnp.sum(p) + jnp.sum(t) + 1.0)

    assert jnp.allclose(loss, ref, atol=1e-5, rtol=1e-5), (loss, ref)
    print("KERNEL_OK")
</pallas_src>

<mosaic_0001>
module attributes {stable_mosaic.version = 11 : i64} {
  func.func @_dice_kernel(%arg0: i32, %arg1: i32, %arg2: memref<16x128xf32, #tpu.memory_space<vmem>>, %arg3: memref<16x128xf32, #tpu.memory_space<vmem>>, %arg4: memref<1x3x8x128xf32, #tpu.memory_space<vmem>>) attributes {dimension_semantics = [#tpu.dimension_semantics<parallel>, #tpu.dimension_semantics<arbitrary>], iteration_bounds = array<i64: 1, 1>, scalar_prefetch = 0 : i64, scratch_operands = 0 : i64, tpu.core_type = #tpu.core_type<tc>, window_params = [{transform_indices = @transform_0, window_bounds = array<i64: 16, 128>}, {transform_indices = @transform_1, window_bounds = array<i64: 16, 128>}, {transform_indices = @transform_2, window_bounds = array<i64: 1, 3, 8, 128>}]} {
    %c0_i32 = arith.constant 0 : i32
    %0 = arith.cmpi eq, %arg1, %c0_i32 : i32
    %1 = arith.extui %0 : i1 to i32
    %c0_i32_0 = arith.constant 0 : i32
    %2 = arith.cmpi ne, %1, %c0_i32_0 : i32
    scf.if %2 {
      %cst_32 = arith.constant 0.000000e+00 : f32
      %41 = vector.broadcast %cst_32 : f32 to vector<1x3x8x128xf32>
      %c0_33 = arith.constant 0 : index
      %c0_34 = arith.constant 0 : index
      %c0_35 = arith.constant 0 : index
      %c0_36 = arith.constant 0 : index
      %42 = vector.load %arg4[%c0_33, %c0_34, %c0_35, %c0_36] : memref<1x3x8x128xf32, #tpu.memory_space<vmem>>, vector<1x3x8x128xf32>
      tpu.vector_store %arg4[%c0_33, %c0_34, %c0_35, %c0_36], %41 {strides = array<i32>} : memref<1x3x8x128xf32, #tpu.memory_space<vmem>>, vector<1x3x8x128xf32>,
    } else {
    }
    %cst = arith.constant 0.000000e+00 : f32
    %3 = vector.broadcast %cst : f32 to vector<8x128xf32>
    %c0 = arith.constant 0 : index
    %c0_1 = arith.constant 0 : index
    %4 = vector.load %arg2[%c0, %c0_1] : memref<16x128xf32, #tpu.memory_space<vmem>>, vector<16x128xf32>
    %c0_2 = arith.constant 0 : index
    %c0_3 = arith.constant 0 : index
    %5 = vector.load %arg3[%c0_2, %c0_3] : memref<16x128xf32, #tpu.memory_space<vmem>>, vector<16x128xf32>
    %cst_4 = arith.constant 5.000000e-01 : f32
    %6 = vector.broadcast %cst_4 : f32 to vector<16x128xf32>
    %7 = arith.mulf %6, %4 : vector<16x128xf32>
    %8 = math.tanh %7 : vector<16x128xf32>
    %cst_5 = arith.constant 5.000000e-01 : f32
    %9 = vector.broadcast %cst_5 : f32 to vector<16x128xf32>
    %10 = arith.mulf %9, %8 : vector<16x128xf32>
    %cst_6 = arith.constant 5.000000e-01 : f32
    %11 = vector.broadcast %cst_6 : f32 to vector<16x128xf32>
    %12 = arith.addf %10, %11 : vector<16x128xf32>
    %13 = arith.mulf %12, %5 : vector<16x128xf32>
    %14 = vector.shape_cast %13 : vector<16x128xf32> to vector<2x8x128xf32>
    %cst_7 = arith.constant dense<0.000000e+00> : vector<8x128xf32>
    %15 = vector.multi_reduction <add>, %14, %cst_7 [0] : vector<2x8x128xf32> to vector<8x128xf32>
    %16 = arith.addf %3, %15 : vector<8x128xf32>
    %17 = vector.shape_cast %12 : vector<16x128xf32> to vector<2x8x128xf32>
    %cst_8 = arith.constant dense<0.000000e+00> : vector<8x128xf32>
    %18 = vector.multi_reduction <add>, %17, %cst_8 [0] : vector<2x8x128xf32> to vector<8x128xf32>
    %19 = arith.addf %3, %18 : vector<8x128xf32>
    %20 = vector.shape_cast %5 : vector<16x128xf32> to vector<2x8x128xf32>
    %cst_9 = arith.constant dense<0.000000e+00> : vector<8x128xf32>
    %21 = vector.multi_reduction <add>, %20, %cst_9 [0] : vector<2x8x128xf32> to vector<8x128xf32>
    %22 = arith.addf %3, %21 : vector<8x128xf32>
    %c0_10 = arith.constant 0 : index
    %c0_11 = arith.constant 0 : index
    %c0_12 = arith.constant 0 : index
    %c0_13 = arith.constant 0 : index
    %23 = vector.load %arg4[%c0_10, %c0_11, %c0_12, %c0_13] : memref<1x3x8x128xf32, #tpu.memory_space<vmem>>, vector<1x1x8x128xf32>
    %24 = vector.shape_cast %23 : vector<1x1x8x128xf32> to vector<8x128xf32>
    %25 = arith.addf %24, %16 : vector<8x128xf32>
    %c0_14 = arith.constant 0 : index
    %c0_15 = arith.constant 0 : index
    %c0_16 = arith.constant 0 : index
    %c0_17 = arith.constant 0 : index
    %26 = vector.load %arg4[%c0_14, %c0_15, %c0_16, %c0_17] : memref<1x3x8x128xf32, #tpu.memory_space<vmem>>, vector<1x1x8x128xf32>
    %27 = vector.shape_cast %26 : vector<1x1x8x128xf32> to vector<8x128xf32>
    %28 = vector.shape_cast %25 : vector<8x128xf32> to vector<1x1x8x128xf32>
    tpu.vector_store %arg4[%c0_14, %c0_15, %c0_16, %c0_17], %28 {strides = array<i32>} : memref<1x3x8x128xf32, #tpu.memory_space<vmem>>, vector<1x1x8x128xf32>,
    %c0_18 = arith.constant 0 : index
    %c1 = arith.constant 1 : index
    %c0_19 = arith.constant 0 : index
    %c0_20 = arith.constant 0 : index
    %29 = vector.load %arg4[%c0_18, %c1, %c0_19, %c0_20] : memref<1x3x8x128xf32, #tpu.memory_space<vmem>>, vector<1x1x8x128xf32>
    %30 = vector.shape_cast %29 : vector<1x1x8x128xf32> to vector<8x128xf32>
    %31 = arith.addf %30, %19 : vector<8x128xf32>
    %c0_21 = arith.constant 0 : index
    %c1_22 = arith.constant 1 : index
    %c0_23 = arith.constant 0 : index
    %c0_24 = arith.constant 0 : index
    %32 = vector.load %arg4[%c0_21, %c1_22, %c0_23, %c0_24] : memref<1x3x8x128xf32, #tpu.memory_space<vmem>>, vector<1x1x8x128xf32>
    %33 = vector.shape_cast %32 : vector<1x1x8x128xf32> to vector<8x128xf32>
    %34 = vector.shape_cast %31 : vector<8x128xf32> to vector<1x1x8x128xf32>
    tpu.vector_store %arg4[%c0_21, %c1_22, %c0_23, %c0_24], %34 {strides = array<i32>} : memref<1x3x8x128xf32, #tpu.memory_space<vmem>>, vector<1x1x8x128xf32>,
    %c0_25 = arith.constant 0 : index
    %c2 = arith.constant 2 : index
    %c0_26 = arith.constant 0 : index
    %c0_27 = arith.constant 0 : index
    %35 = vector.load %arg4[%c0_25, %c2, %c0_26, %c0_27] : memref<1x3x8x128xf32, #tpu.memory_space<vmem>>, vector<1x1x8x128xf32>
    %36 = vector.shape_cast %35 : vector<1x1x8x128xf32> to vector<8x128xf32>
    %37 = arith.addf %36, %22 : vector<8x128xf32>
    %c0_28 = arith.constant 0 : index
    %c2_29 = arith.constant 2 : index
    %c0_30 = arith.constant 0 : index
    %c0_31 = arith.constant 0 : index
    %38 = vector.load %arg4[%c0_28, %c2_29, %c0_30, %c0_31] : memref<1x3x8x128xf32, #tpu.memory_space<vmem>>, vector<1x1x8x128xf32>
    %39 = vector.shape_cast %38 : vector<1x1x8x128xf32> to vector<8x128xf32>
    %40 = vector.shape_cast %37 : vector<8x128xf32> to vector<1x1x8x128xf32>
    tpu.vector_store %arg4[%c0_28, %c2_29, %c0_30, %c0_31], %40 {strides = array<i32>} : memref<1x3x8x128xf32, #tpu.memory_space<vmem>>, vector<1x1x8x128xf32>,
    return
  }
  func.func @transform_0(%arg0: i32, %arg1: i32) -> (i32, i32) {
    %c1_i32 = arith.constant 1 : i32
    %0 = arith.muli %arg0, %c1_i32 : i32
    %1 = arith.addi %0, %arg1 : i32
    %c0_i32 = arith.constant 0 : i32
    %2 = arith.minsi %1, %c0_i32 : i32
    %c0_i32_0 = arith.constant 0 : i32
    %c0_i32_1 = arith.constant 0 : i32
    return %2, %c0_i32_0 : i32, i32
  }
  func.func @transform_1(%arg0: i32, %arg1: i32) -> (i32, i32) {
    %c1_i32 = arith.constant 1 : i32
    %0 = arith.muli %arg0, %c1_i32 : i32
    %1 = arith.addi %0, %arg1 : i32
    %c0_i32 = arith.constant 0 : i32
    %2 = arith.minsi %1, %c0_i32 : i32
    %c0_i32_0 = arith.constant 0 : i32
    %c0_i32_1 = arith.constant 0 : i32
    return %2, %c0_i32_0 : i32, i32
  }
  func.func @transform_2(%arg0: i32, %arg1: i32) -> (i32, i32, i32, i32) {
    %c0_i32 = arith.constant 0 : i32
    %c0_i32_0 = arith.constant 0 : i32
    %c0_i32_1 = arith.constant 0 : i32
    %c0_i32_2 = arith.constant 0 : i32
    return %arg0, %c0_i32, %c0_i32_0, %c0_i32_1 : i32, i32, i32, i32
  }
}

</mosaic_0001>

<bundles_post_ra>
// kernel: dice_loss.1
= control target key start
LH: loop header
LB: loop body
LE: loop exit
PB: predicated region body
PF: predicated region fallthrough
CT: control target
= control target key end

     0   :  { %s174_s0 = inlined_call_operand.vmem [shape: f32[16,128], index: 0, kind: input, shape index: {}]   ;;  %s175_s1 = inlined_call_operand.vmem [shape: f32[16,128], index: 1, kind: input, shape index: {}]   ;;  %s176_s2 = inlined_call_operand.vmem [shape: f32[1,3,8,128], index: 2, kind: output, shape index: {}]  }
   0x1   :  { %v82_v0 = vld [vmem:[%s174_s0] sm:$0xff]  ;;  %v83_v1 = vld [vmem:[%s174_s0 + $0x8] sm:$0xff] }
   0x2   :  { %v84_v2 = vld [vmem:[%s175_s1] sm:$0xff]  ;;  %v85_v3 = vld [vmem:[%s175_s1 + $0x8] sm:$0xff]  ;;  %v86_v4 = vmul.f32 0.5, %v82_v0  ;;  %v87_v5 = vmul.f32 0.5, %v83_v1 }
   0x3   :  { %v100_v6 = vadd.f32 %v85_v3, %v84_v2 }
   0x4   :  { %134 = vtanh.f32 %v86_v4 }
   0x5   :  { %136 = vtanh.f32 %v87_v5  ;;  %132 = vst [vmem:[%s176_s2 + $0x10] sm:$0xff] %v100_v6 }
   0xe   :  { %v135_v7 = vpop.eup %134 }
   0xf   :  { %v137_v8 = vpop.eup %136  ;;  %v90_v9 = vmul.f32 0.5, %v135_v7 }
  0x10   :  { %v91_v10 = vmul.f32 0.5, %v137_v8 }
  0x11   :  { %v92_v11 = vadd.f32 0.5, %v90_v9 }
  0x12   :  { %v93_v12 = vadd.f32 0.5, %v91_v10 }
  0x13   :  { %v94_v13 = vmul.f32 %v92_v11, %v84_v2 }
  0x14   :  { %v95_v14 = vmul.f32 %v93_v12, %v85_v3  ;;  %v98_v15 = vadd.f32 %v93_v12, %v92_v11 }
  0x16   :  { %v96_v16 = vadd.f32 %v95_v14, %v94_v13  ;;  %130 = vst [vmem:[%s176_s2 + $0x8] sm:$0xff] %v98_v15 }
  0x18   :  { %104 = vst [vmem:[%s176_s2] sm:$0xff] %v96_v16 }

</bundles_post_ra>
